<compile_context>
chip_gen: v6e
topology: v6e:2x2x1
jax: 0.10.0
libtpu: 0.0.40
codegen_flags: <defaults>
</compile_context>

<pallas_src>
import jax
import jax.numpy as jnp
from jax.experimental import pallas as pl
from jax.experimental.pallas import tpu as pltpu  # noqa: F401  (TPU backend assumed)


# ----------------------------------------------------------------------------
# Shared activation (usable both inside Pallas kernels and in the JAX reference)
# ----------------------------------------------------------------------------
def _leaky(x):
    return jnp.where(x >= 0, x, 0.2 * x)  # F.leaky_relu(x, 0.2)


# ----------------------------------------------------------------------------
# Generic fused LinearOutputStack kernel: 3 x (Linear + LeakyReLU) + Linear.
# Single invocation, full arrays in VMEM, one lane-dense output store.
# ----------------------------------------------------------------------------
def _mlp_stack_kernel(x_ref, w0_ref, b0_ref, w1_ref, b1_ref, w2_ref, b2_ref,
                      w3_ref, b3_ref, o_ref):
    h = x_ref[...]
    h = _leaky(jnp.dot(h, w0_ref[...], preferred_element_type=jnp.float32) + b0_ref[...])
    h = _leaky(jnp.dot(h, w1_ref[...], preferred_element_type=jnp.float32) + b1_ref[...])
    h = _leaky(jnp.dot(h, w2_ref[...], preferred_element_type=jnp.float32) + b2_ref[...])
    o_ref[...] = (jnp.dot(h, w3_ref[...], preferred_element_type=jnp.float32)
                  + b3_ref[...]).astype(o_ref.dtype)


def linear_output_stack(x2d, params):
    """Apply one LinearOutputStack to a 2-D (N, in_ch) input via one pallas_call."""
    (w0, b0), (w1, b1), (w2, b2), (w3, b3) = params
    n = x2d.shape[0]
    out_ch = w3.shape[1]
    return pl.pallas_call(
        _mlp_stack_kernel,
        out_shape=jax.ShapeDtypeStruct((n, out_ch), x2d.dtype),
    )(x2d, w0, b0, w1, b1, w2, b2, w3, b3)


# ----------------------------------------------------------------------------
# Fully fused kernel for the default forward path (seq is None):
#   latent_embedding + residual, context_embedding(zeros), generator.
# One launch, two outputs.
# ----------------------------------------------------------------------------
def _serialgen_default_kernel(z_ref,
                              wl_ref, bl_ref,          # latent stack  (4,C,C), (4,1,C)
                              wc_ref, bc_ref,          # context stack (4,C,C), (4,1,C)
                              wg0a_ref, wg0b_ref, bg0_ref,   # generator layer0 split
                              wg1_ref, bg1_ref,
                              wg2_ref, bg2_ref,
                              wg3_ref, bg3_ref,
                              latent_ref, gen_ref):
    z = z_ref[...]                                           # (B, C)

    # latent = latent_embedding(z) + z
    h = z
    for i in range(3):
        h = _leaky(jnp.dot(h, wl_ref[i], preferred_element_type=jnp.float32) + bl_ref[i])
    latent = jnp.dot(h, wl_ref[3], preferred_element_type=jnp.float32) + bl_ref[3] + z
    latent_ref[...] = latent.astype(latent_ref.dtype)

    # seq = context_embedding(zeros(B,1,C)); zeros @ W0 == 0 so layer0 = bias only.
    # Computed at (1, C): every batch row is identical (zero input). No zeros DMA.
    c = _leaky(bc_ref[0])                                    # (1, C)
    for i in range(1, 3):
        c = _leaky(jnp.dot(c, wc_ref[i], preferred_element_type=jnp.float32) + bc_ref[i])
    ctx = jnp.dot(c, wc_ref[3], preferred_element_type=jnp.float32) + bc_ref[3]   # (1, C)

    # generator(cat([latent, ctx], -1)): first-layer weight pre-split -> no concat.
    g = (jnp.dot(latent, wg0a_ref[...], preferred_element_type=jnp.float32)
         + jnp.dot(ctx, wg0b_ref[...], preferred_element_type=jnp.float32)
         + bg0_ref[...])
    g = _leaky(g)
    g = _leaky(jnp.dot(g, wg1_ref[...], preferred_element_type=jnp.float32) + bg1_ref[...])
    g = _leaky(jnp.dot(g, wg2_ref[...], preferred_element_type=jnp.float32) + bg2_ref[...])
    gen = jnp.dot(g, wg3_ref[...], preferred_element_type=jnp.float32) + bg3_ref[...]
    gen_ref[...] = gen.astype(gen_ref.dtype)                 # (B, C*frames), lane-dense


def serialgen_default_forward(z, latent_params, context_params, gen_params):
    B, C = z.shape
    wl = jnp.stack([w for w, _ in latent_params])            # (4, C, C)
    bl = jnp.stack([b for _, b in latent_params])            # (4, 1, C)
    wc = jnp.stack([w for w, _ in context_params])
    bc = jnp.stack([b for _, b in context_params])
    (wg0, bg0), (wg1, bg1), (wg2, bg2), (wg3, bg3) = gen_params
    wg0a, wg0b = wg0[:C, :], wg0[C:, :]                      # latent half / ctx half
    out_ch = wg3.shape[1]                                    # C * frames
    latent, gen = pl.pallas_call(
        _serialgen_default_kernel,
        out_shape=(jax.ShapeDtypeStruct((B, C), z.dtype),
                   jax.ShapeDtypeStruct((B, out_ch), z.dtype)),
    )(z, wl, bl, wc, bc, wg0a, wg0b, bg0, wg1, bg1, wg2, bg2, wg3, bg3)
    return latent, gen


# ----------------------------------------------------------------------------
# Parameter init (weights stored (in, out) so y = x @ W + b, same math as torch)
# ----------------------------------------------------------------------------
def _init_stack(key, in_ch, channels, out_ch, n_hidden=3):
    dims = [in_ch] + [channels] * n_hidden + [out_ch]
    keys = jax.random.split(key, len(dims) - 1)
    params = []
    for k, di, do in zip(keys, dims[:-1], dims[1:]):
        kw, kb = jax.random.split(k)
        w = jax.random.normal(kw, (di, do), jnp.float32) / jnp.sqrt(di)
        b = 0.1 * jax.random.normal(kb, (1, do), jnp.float32)
        params.append((w, b))
    return params


# ----------------------------------------------------------------------------
# Module
# ----------------------------------------------------------------------------
class SerialGenerator:
    def __init__(self, channels, frames, strides, max_length=512, *, key):
        self.channels = channels
        self.frames = frames
        self.strides = tuple(strides)
        C = channels
        keys = jax.random.split(key, 4 + len(self.strides))
        self.latent_embedding = _init_stack(keys[0], C, C, C)
        self.context_embedding = _init_stack(keys[1], C, C, C)
        self.down = _init_stack(keys[2], C * len(self.strides), C, C)
        self.strided = {s: _init_stack(k, C, C, C)
                        for s, k in zip(self.strides, keys[3:3 + len(self.strides)])}
        self.generator = _init_stack(keys[3 + len(self.strides)], 2 * C, C, C * frames)
        self.env = jnp.linspace(0.0, 1.0, max_length, dtype=jnp.float32) ** 2

    # -------------------- Pallas forward --------------------
    def __call__(self, z, seq=None):
        B, C = z.shape[0], self.channels
        if seq is None:
            # Whole path in one fused pallas_call.
            latent, gen = serialgen_default_forward(
                z, self.latent_embedding, self.context_embedding, self.generator)
            orig_seq = jnp.zeros((B, 1, C), z.dtype)
        else:
            orig_seq = seq
            latent = linear_output_stack(z, self.latent_embedding) + z
            summaries = []
            for stride in self.strides:
                # NOTE: mirrors the torch code exactly, which slices env with
                # seq.shape[0] (dim 0) — requires batch == seq_len to broadcast.
                env_seg = self.env[-seq.shape[0]:]
                s = seq * env_seg[None, :, None]
                s = jnp.max(s[:, ::stride, :], axis=1)                 # (B, C)
                s = linear_output_stack(s, self.strided[stride])       # (B, C)
                summaries.append(s)
            sq = jnp.concatenate(summaries, axis=-1)                   # (B, C*len(strides))
            sq = linear_output_stack(sq, self.down)                    # (B, C)
            sq = linear_output_stack(sq, self.context_embedding)       # (B, C)
            gen_in = jnp.concatenate([latent, sq], axis=-1)            # (B, 2C)
            gen = linear_output_stack(gen_in, self.generator)          # (B, C*frames)
        x = gen.reshape(B, self.frames, C)
        x = jnp.concatenate([orig_seq, x], axis=1)
        return latent, x

    # -------------------- pure-JAX reference (mirrors torch forward) --------------------
    def reference(self, z, seq=None):
        def stack(x, params):
            *hidden, (wf, bf) = params
            h = x
            for w, b in hidden:
                h = _leaky(h @ w + b)
            return h @ wf + bf

        B, C = z.shape[0], self.channels
        latent = stack(z, self.latent_embedding) + z
        if seq is None:
            sq = jnp.zeros((B, 1, C), z.dtype)
            orig_seq = sq
        else:
            orig_seq = seq
            summaries = []
            for stride in self.strides:
                env_seg = self.env[-seq.shape[0]:]
                s = seq * env_seg[None, :, None]
                s = jnp.max(s[:, ::stride, :], axis=1, keepdims=True)
                s = stack(s, self.strided[stride])
                summaries.append(s)
            sq = jnp.concatenate(summaries, axis=-1)
            sq = stack(sq, self.down)
        sq = stack(sq, self.context_embedding)
        x = jnp.concatenate([latent.reshape(B, 1, C), sq], axis=-1)
        x = stack(x, self.generator)
        x = x.reshape(B, self.frames, C)
        x = jnp.concatenate([orig_seq, x], axis=1)
        return latent, x


# ----------------------------------------------------------------------------
if __name__ == "__main__":
    key = jax.random.PRNGKey(0)
    k_model, k_z, k_seq = jax.random.split(key, 3)

    channels, frames, strides = 32, 8, (2, 4)
    B = 2
    model = SerialGenerator(channels, frames, strides, max_length=512, key=k_model)

    z = jax.random.normal(k_z, (B, channels), jnp.float32)

    # Path 1: seq=None (single fused Pallas launch).
    latent, x = model(z)
    latent, x = jax.block_until_ready((latent, x))
    ref_latent, ref_x = model.reference(z)
    assert latent.shape == (B, channels), latent.shape
    assert x.shape == (B, frames + 1, channels), x.shape
    assert bool(jnp.allclose(latent, ref_latent, rtol=2e-2, atol=2e-2)), "latent mismatch"
    assert bool(jnp.allclose(x, ref_x, rtol=2e-2, atol=2e-2)), "x mismatch"

    # Path 2: provided seq (batch == seq_len, as the original torch indexing requires).
    T = B
    seq = 0.5 * jax.random.normal(k_seq, (B, T, channels), jnp.float32)
    latent2, x2 = model(z, seq)
    latent2, x2 = jax.block_until_ready((latent2, x2))
    ref_latent2, ref_x2 = model.reference(z, seq)
    assert x2.shape == (B, T + frames, channels), x2.shape
    assert bool(jnp.allclose(latent2, ref_latent2, rtol=2e-2, atol=2e-2)), "latent(seq) mismatch"
    assert bool(jnp.allclose(x2, ref_x2, rtol=2e-2, atol=2e-2)), "x(seq) mismatch"

    print("KERNEL_OK")
</pallas_src>

<mosaic_0001>
module attributes {stable_mosaic.version = 11 : i64} {
  func.func @_serialgen_default_kernel(%arg0: memref<2x32xf32, #tpu.memory_space<vmem>>, %arg1: memref<4x32x32xf32, #tpu.memory_space<vmem>>, %arg2: memref<4x1x32xf32, #tpu.memory_space<vmem>>, %arg3: memref<4x32x32xf32, #tpu.memory_space<vmem>>, %arg4: memref<4x1x32xf32, #tpu.memory_space<vmem>>, %arg5: memref<32x32xf32, #tpu.memory_space<vmem>>, %arg6: memref<32x32xf32, #tpu.memory_space<vmem>>, %arg7: memref<1x32xf32, #tpu.memory_space<vmem>>, %arg8: memref<32x32xf32, #tpu.memory_space<vmem>>, %arg9: memref<1x32xf32, #tpu.memory_space<vmem>>, %arg10: memref<32x32xf32, #tpu.memory_space<vmem>>, %arg11: memref<1x32xf32, #tpu.memory_space<vmem>>, %arg12: memref<32x256xf32, #tpu.memory_space<vmem>>, %arg13: memref<1x256xf32, #tpu.memory_space<vmem>>, %arg14: memref<2x32xf32, #tpu.memory_space<vmem>>, %arg15: memref<2x256xf32, #tpu.memory_space<vmem>>) attributes {dimension_semantics = [], scalar_prefetch = 0 : i64, scratch_operands = 0 : i64, tpu.core_type = #tpu.core_type<tc>} {
    %c0 = arith.constant 0 : index
    %c0_0 = arith.constant 0 : index
    %0 = vector.load %arg0[%c0, %c0_0] : memref<2x32xf32, #tpu.memory_space<vmem>>, vector<2x32xf32>
    %c0_1 = arith.constant 0 : index
    %c0_2 = arith.constant 0 : index
    %c0_3 = arith.constant 0 : index
    %1 = vector.load %arg1[%c0_1, %c0_2, %c0_3] : memref<4x32x32xf32, #tpu.memory_space<vmem>>, vector<1x32x32xf32>
    %2 = vector.shape_cast %1 : vector<1x32x32xf32> to vector<32x32xf32>
    %cst = arith.constant dense<0.000000e+00> : vector<2x32xf32>
    %3 = tpu.matmul %0, %2, %cst {dimension_numbers = #tpu.dot_dimension_numbers<[1], [0], [0], [1], [0, 0, 1, 1], [], []>} : vector<2x32xf32>, vector<32x32xf32>, vector<2x32xf32> -> vector<2x32xf32>
    %c0_4 = arith.constant 0 : index
    %c0_5 = arith.constant 0 : index
    %c0_6 = arith.constant 0 : index
    %4 = vector.load %arg2[%c0_4, %c0_5, %c0_6] : memref<4x1x32xf32, #tpu.memory_space<vmem>>, vector<1x1x32xf32>
    %5 = vector.shape_cast %4 : vector<1x1x32xf32> to vector<1x32xf32>
    %6 = vector.broadcast %5 : vector<1x32xf32> to vector<2x32xf32>
    %7 = arith.addf %3, %6 : vector<2x32xf32>
    %cst_7 = arith.constant 0.000000e+00 : f32
    %8 = vector.broadcast %cst_7 : f32 to vector<2x32xf32>
    %9 = arith.cmpf oge, %7, %8 : vector<2x32xf32>
    %cst_8 = arith.constant 2.000000e-01 : f32
    %10 = vector.broadcast %cst_8 : f32 to vector<2x32xf32>
    %11 = arith.mulf %10, %7 : vector<2x32xf32>
    %12 = arith.select %9, %7, %11 : vector<2x32xi1>, vector<2x32xf32>
    %c1 = arith.constant 1 : index
    %c0_9 = arith.constant 0 : index
    %c0_10 = arith.constant 0 : index
    %13 = vector.load %arg1[%c1, %c0_9, %c0_10] : memref<4x32x32xf32, #tpu.memory_space<vmem>>, vector<1x32x32xf32>
    %14 = vector.shape_cast %13 : vector<1x32x32xf32> to vector<32x32xf32>
    %cst_11 = arith.constant dense<0.000000e+00> : vector<2x32xf32>
    %15 = tpu.matmul %12, %14, %cst_11 {dimension_numbers = #tpu.dot_dimension_numbers<[1], [0], [0], [1], [0, 0, 1, 1], [], []>} : vector<2x32xf32>, vector<32x32xf32>, vector<2x32xf32> -> vector<2x32xf32>
    %c1_12 = arith.constant 1 : index
    %c0_13 = arith.constant 0 : index
    %c0_14 = arith.constant 0 : index
    %16 = vector.load %arg2[%c1_12, %c0_13, %c0_14] : memref<4x1x32xf32, #tpu.memory_space<vmem>>, vector<1x1x32xf32>
    %17 = vector.shape_cast %16 : vector<1x1x32xf32> to vector<1x32xf32>
    %18 = vector.broadcast %17 : vector<1x32xf32> to vector<2x32xf32>
    %19 = arith.addf %15, %18 : vector<2x32xf32>
    %cst_15 = arith.constant 0.000000e+00 : f32
    %20 = vector.broadcast %cst_15 : f32 to vector<2x32xf32>
    %21 = arith.cmpf oge, %19, %20 : vector<2x32xf32>
    %cst_16 = arith.constant 2.000000e-01 : f32
    %22 = vector.broadcast %cst_16 : f32 to vector<2x32xf32>
    %23 = arith.mulf %22, %19 : vector<2x32xf32>
    %24 = arith.select %21, %19, %23 : vector<2x32xi1>, vector<2x32xf32>
    %c2 = arith.constant 2 : index
    %c0_17 = arith.constant 0 : index
    %c0_18 = arith.constant 0 : index
    %25 = vector.load %arg1[%c2, %c0_17, %c0_18] : memref<4x32x32xf32, #tpu.memory_space<vmem>>, vector<1x32x32xf32>
    %26 = vector.shape_cast %25 : vector<1x32x32xf32> to vector<32x32xf32>
    %cst_19 = arith.constant dense<0.000000e+00> : vector<2x32xf32>
    %27 = tpu.matmul %24, %26, %cst_19 {dimension_numbers = #tpu.dot_dimension_numbers<[1], [0], [0], [1], [0, 0, 1, 1], [], []>} : vector<2x32xf32>, vector<32x32xf32>, vector<2x32xf32> -> vector<2x32xf32>
    %c2_20 = arith.constant 2 : index
    %c0_21 = arith.constant 0 : index
    %c0_22 = arith.constant 0 : index
    %28 = vector.load %arg2[%c2_20, %c0_21, %c0_22] : memref<4x1x32xf32, #tpu.memory_space<vmem>>, vector<1x1x32xf32>
    %29 = vector.shape_cast %28 : vector<1x1x32xf32> to vector<1x32xf32>
    %30 = vector.broadcast %29 : vector<1x32xf32> to vector<2x32xf32>
    %31 = arith.addf %27, %30 : vector<2x32xf32>
    %cst_23 = arith.constant 0.000000e+00 : f32
    %32 = vector.broadcast %cst_23 : f32 to vector<2x32xf32>
    %33 = arith.cmpf oge, %31, %32 : vector<2x32xf32>
    %cst_24 = arith.constant 2.000000e-01 : f32
    %34 = vector.broadcast %cst_24 : f32 to vector<2x32xf32>
    %35 = arith.mulf %34, %31 : vector<2x32xf32>
    %36 = arith.select %33, %31, %35 : vector<2x32xi1>, vector<2x32xf32>
    %c3 = arith.constant 3 : index
    %c0_25 = arith.constant 0 : index
    %c0_26 = arith.constant 0 : index
    %37 = vector.load %arg1[%c3, %c0_25, %c0_26] : memref<4x32x32xf32, #tpu.memory_space<vmem>>, vector<1x32x32xf32>
    %38 = vector.shape_cast %37 : vector<1x32x32xf32> to vector<32x32xf32>
    %cst_27 = arith.constant dense<0.000000e+00> : vector<2x32xf32>
    %39 = tpu.matmul %36, %38, %cst_27 {dimension_numbers = #tpu.dot_dimension_numbers<[1], [0], [0], [1], [0, 0, 1, 1], [], []>} : vector<2x32xf32>, vector<32x32xf32>, vector<2x32xf32> -> vector<2x32xf32>
    %c3_28 = arith.constant 3 : index
    %c0_29 = arith.constant 0 : index
    %c0_30 = arith.constant 0 : index
    %40 = vector.load %arg2[%c3_28, %c0_29, %c0_30] : memref<4x1x32xf32, #tpu.memory_space<vmem>>, vector<1x1x32xf32>
    %41 = vector.shape_cast %40 : vector<1x1x32xf32> to vector<1x32xf32>
    %42 = vector.broadcast %41 : vector<1x32xf32> to vector<2x32xf32>
    %43 = arith.addf %39, %42 : vector<2x32xf32>
    %44 = arith.addf %43, %0 : vector<2x32xf32>
    %c0_31 = arith.constant 0 : index
    %c0_32 = arith.constant 0 : index
    %45 = vector.load %arg14[%c0_31, %c0_32] : memref<2x32xf32, #tpu.memory_space<vmem>>, vector<2x32xf32>
    tpu.vector_store %arg14[%c0_31, %c0_32], %44 {strides = array<i32>} : memref<2x32xf32, #tpu.memory_space<vmem>>, vector<2x32xf32>,
    %c0_33 = arith.constant 0 : index
    %c0_34 = arith.constant 0 : index
    %c0_35 = arith.constant 0 : index
    %46 = vector.load %arg4[%c0_33, %c0_34, %c0_35] : memref<4x1x32xf32, #tpu.memory_space<vmem>>, vector<1x1x32xf32>
    %47 = vector.shape_cast %46 : vector<1x1x32xf32> to vector<1x32xf32>
    %cst_36 = arith.constant 0.000000e+00 : f32
    %48 = vector.broadcast %cst_36 : f32 to vector<1x32xf32>
    %49 = arith.cmpf oge, %47, %48 : vector<1x32xf32>
    %cst_37 = arith.constant 2.000000e-01 : f32
    %50 = vector.broadcast %cst_37 : f32 to vector<1x32xf32>
    %51 = arith.mulf %50, %47 : vector<1x32xf32>
    %52 = arith.select %49, %47, %51 : vector<1x32xi1>, vector<1x32xf32>
    %c1_38 = arith.constant 1 : index
    %c0_39 = arith.constant 0 : index
    %c0_40 = arith.constant 0 : index
    %53 = vector.load %arg3[%c1_38, %c0_39, %c0_40] : memref<4x32x32xf32, #tpu.memory_space<vmem>>, vector<1x32x32xf32>
    %54 = vector.shape_cast %53 : vector<1x32x32xf32> to vector<32x32xf32>
    %cst_41 = arith.constant dense<0.000000e+00> : vector<1x32xf32>
    %55 = tpu.matmul %52, %54, %cst_41 {dimension_numbers = #tpu.dot_dimension_numbers<[1], [0], [0], [1], [0, 0, 1, 1], [], []>} : vector<1x32xf32>, vector<32x32xf32>, vector<1x32xf32> -> vector<1x32xf32>
    %c1_42 = arith.constant 1 : index
    %c0_43 = arith.constant 0 : index
    %c0_44 = arith.constant 0 : index
    %56 = vector.load %arg4[%c1_42, %c0_43, %c0_44] : memref<4x1x32xf32, #tpu.memory_space<vmem>>, vector<1x1x32xf32>
    %57 = vector.shape_cast %56 : vector<1x1x32xf32> to vector<1x32xf32>
    %58 = arith.addf %55, %57 : vector<1x32xf32>
    %cst_45 = arith.constant 0.000000e+00 : f32
    %59 = vector.broadcast %cst_45 : f32 to vector<1x32xf32>
    %60 = arith.cmpf oge, %58, %59 : vector<1x32xf32>
    %cst_46 = arith.constant 2.000000e-01 : f32
    %61 = vector.broadcast %cst_46 : f32 to vector<1x32xf32>
    %62 = arith.mulf %61, %58 : vector<1x32xf32>
    %63 = arith.select %60, %58, %62 : vector<1x32xi1>, vector<1x32xf32>
    %c2_47 = arith.constant 2 : index
    %c0_48 = arith.constant 0 : index
    %c0_49 = arith.constant 0 : index
    %64 = vector.load %arg3[%c2_47, %c0_48, %c0_49] : memref<4x32x32xf32, #tpu.memory_space<vmem>>, vector<1x32x32xf32>
    %65 = vector.shape_cast %64 : vector<1x32x32xf32> to vector<32x32xf32>
    %cst_50 = arith.constant dense<0.000000e+00> : vector<1x32xf32>
    %66 = tpu.matmul %63, %65, %cst_50 {dimension_numbers = #tpu.dot_dimension_numbers<[1], [0], [0], [1], [0, 0, 1, 1], [], []>} : vector<1x32xf32>, vector<32x32xf32>, vector<1x32xf32> -> vector<1x32xf32>
    %c2_51 = arith.constant 2 : index
    %c0_52 = arith.constant 0 : index
    %c0_53 = arith.constant 0 : index
    %67 = vector.load %arg4[%c2_51, %c0_52, %c0_53] : memref<4x1x32xf32, #tpu.memory_space<vmem>>, vector<1x1x32xf32>
    %68 = vector.shape_cast %67 : vector<1x1x32xf32> to vector<1x32xf32>
    %69 = arith.addf %66, %68 : vector<1x32xf32>
    %cst_54 = arith.constant 0.000000e+00 : f32
    %70 = vector.broadcast %cst_54 : f32 to vector<1x32xf32>
    %71 = arith.cmpf oge, %69, %70 : vector<1x32xf32>
    %cst_55 = arith.constant 2.000000e-01 : f32
    %72 = vector.broadcast %cst_55 : f32 to vector<1x32xf32>
    %73 = arith.mulf %72, %69 : vector<1x32xf32>
    %74 = arith.select %71, %69, %73 : vector<1x32xi1>, vector<1x32xf32>
    %c3_56 = arith.constant 3 : index
    %c0_57 = arith.constant 0 : index
    %c0_58 = arith.constant 0 : index
    %75 = vector.load %arg3[%c3_56, %c0_57, %c0_58] : memref<4x32x32xf32, #tpu.memory_space<vmem>>, vector<1x32x32xf32>
    %76 = vector.shape_cast %75 : vector<1x32x32xf32> to vector<32x32xf32>
    %cst_59 = arith.constant dense<0.000000e+00> : vector<1x32xf32>
    %77 = tpu.matmul %74, %76, %cst_59 {dimension_numbers = #tpu.dot_dimension_numbers<[1], [0], [0], [1], [0, 0, 1, 1], [], []>} : vector<1x32xf32>, vector<32x32xf32>, vector<1x32xf32> -> vector<1x32xf32>
    %c3_60 = arith.constant 3 : index
    %c0_61 = arith.constant 0 : index
    %c0_62 = arith.constant 0 : index
    %78 = vector.load %arg4[%c3_60, %c0_61, %c0_62] : memref<4x1x32xf32, #tpu.memory_space<vmem>>, vector<1x1x32xf32>
    %79 = vector.shape_cast %78 : vector<1x1x32xf32> to vector<1x32xf32>
    %80 = arith.addf %77, %79 : vector<1x32xf32>
    %c0_63 = arith.constant 0 : index
    %c0_64 = arith.constant 0 : index
    %81 = vector.load %arg5[%c0_63, %c0_64] : memref<32x32xf32, #tpu.memory_space<vmem>>, vector<32x32xf32>
    %cst_65 = arith.constant dense<0.000000e+00> : vector<2x32xf32>
    %82 = tpu.matmul %44, %81, %cst_65 {dimension_numbers = #tpu.dot_dimension_numbers<[1], [0], [0], [1], [0, 0, 1, 1], [], []>} : vector<2x32xf32>, vector<32x32xf32>, vector<2x32xf32> -> vector<2x32xf32>
    %c0_66 = arith.constant 0 : index
    %c0_67 = arith.constant 0 : index
    %83 = vector.load %arg6[%c0_66, %c0_67] : memref<32x32xf32, #tpu.memory_space<vmem>>, vector<32x32xf32>
    %cst_68 = arith.constant dense<0.000000e+00> : vector<1x32xf32>
    %84 = tpu.matmul %80, %83, %cst_68 {dimension_numbers = #tpu.dot_dimension_numbers<[1], [0], [0], [1], [0, 0, 1, 1], [], []>} : vector<1x32xf32>, vector<32x32xf32>, vector<1x32xf32> -> vector<1x32xf32>
    %85 = vector.broadcast %84 : vector<1x32xf32> to vector<2x32xf32>
    %86 = arith.addf %82, %85 : vector<2x32xf32>
    %c0_69 = arith.constant 0 : index
    %c0_70 = arith.constant 0 : index
    %87 = vector.load %arg7[%c0_69, %c0_70] : memref<1x32xf32, #tpu.memory_space<vmem>>, vector<1x32xf32>
    %88 = vector.broadcast %87 : vector<1x32xf32> to vector<2x32xf32>
    %89 = arith.addf %86, %88 : vector<2x32xf32>
    %cst_71 = arith.constant 0.000000e+00 : f32
    %90 = vector.broadcast %cst_71 : f32 to vector<2x32xf32>
    %91 = arith.cmpf oge, %89, %90 : vector<2x32xf32>
    %cst_72 = arith.constant 2.000000e-01 : f32
    %92 = vector.broadcast %cst_72 : f32 to vector<2x32xf32>
    %93 = arith.mulf %92, %89 : vector<2x32xf32>
    %94 = arith.select %91, %89, %93 : vector<2x32xi1>, vector<2x32xf32>
    %c0_73 = arith.constant 0 : index
    %c0_74 = arith.constant 0 : index
    %95 = vector.load %arg8[%c0_73, %c0_74] : memref<32x32xf32, #tpu.memory_space<vmem>>, vector<32x32xf32>
    %cst_75 = arith.constant dense<0.000000e+00> : vector<2x32xf32>
    %96 = tpu.matmul %94, %95, %cst_75 {dimension_numbers = #tpu.dot_dimension_numbers<[1], [0], [0], [1], [0, 0, 1, 1], [], []>} : vector<2x32xf32>, vector<32x32xf32>, vector<2x32xf32> -> vector<2x32xf32>
    %c0_76 = arith.constant 0 : index
    %c0_77 = arith.constant 0 : index
    %97 = vector.load %arg9[%c0_76, %c0_77] : memref<1x32xf32, #tpu.memory_space<vmem>>, vector<1x32xf32>
    %98 = vector.broadcast %97 : vector<1x32xf32> to vector<2x32xf32>
    %99 = arith.addf %96, %98 : vector<2x32xf32>
    %cst_78 = arith.constant 0.000000e+00 : f32
    %100 = vector.broadcast %cst_78 : f32 to vector<2x32xf32>
    %101 = arith.cmpf oge, %99, %100 : vector<2x32xf32>
    %cst_79 = arith.constant 2.000000e-01 : f32
    %102 = vector.broadcast %cst_79 : f32 to vector<2x32xf32>
    %103 = arith.mulf %102, %99 : vector<2x32xf32>
    %104 = arith.select %101, %99, %103 : vector<2x32xi1>, vector<2x32xf32>
    %c0_80 = arith.constant 0 : index
    %c0_81 = arith.constant 0 : index
    %105 = vector.load %arg10[%c0_80, %c0_81] : memref<32x32xf32, #tpu.memory_space<vmem>>, vector<32x32xf32>
    %cst_82 = arith.constant dense<0.000000e+00> : vector<2x32xf32>
    %106 = tpu.matmul %104, %105, %cst_82 {dimension_numbers = #tpu.dot_dimension_numbers<[1], [0], [0], [1], [0, 0, 1, 1], [], []>} : vector<2x32xf32>, vector<32x32xf32>, vector<2x32xf32> -> vector<2x32xf32>
    %c0_83 = arith.constant 0 : index
    %c0_84 = arith.constant 0 : index
    %107 = vector.load %arg11[%c0_83, %c0_84] : memref<1x32xf32, #tpu.memory_space<vmem>>, vector<1x32xf32>
    %108 = vector.broadcast %107 : vector<1x32xf32> to vector<2x32xf32>
    %109 = arith.addf %106, %108 : vector<2x32xf32>
    %cst_85 = arith.constant 0.000000e+00 : f32
    %110 = vector.broadcast %cst_85 : f32 to vector<2x32xf32>
    %111 = arith.cmpf oge, %109, %110 : vector<2x32xf32>
    %cst_86 = arith.constant 2.000000e-01 : f32
    %112 = vector.broadcast %cst_86 : f32 to vector<2x32xf32>
    %113 = arith.mulf %112, %109 : vector<2x32xf32>
    %114 = arith.select %111, %109, %113 : vector<2x32xi1>, vector<2x32xf32>
    %c0_87 = arith.constant 0 : index
    %c0_88 = arith.constant 0 : index
    %115 = vector.load %arg12[%c0_87, %c0_88] : memref<32x256xf32, #tpu.memory_space<vmem>>, vector<32x256xf32>
    %cst_89 = arith.constant dense<0.000000e+00> : vector<2x256xf32>
    %116 = tpu.matmul %114, %115, %cst_89 {dimension_numbers = #tpu.dot_dimension_numbers<[1], [0], [0], [1], [0, 0, 1, 1], [], []>} : vector<2x32xf32>, vector<32x256xf32>, vector<2x256xf32> -> vector<2x256xf32>
    %c0_90 = arith.constant 0 : index
    %c0_91 = arith.constant 0 : index
    %117 = vector.load %arg13[%c0_90, %c0_91] : memref<1x256xf32, #tpu.memory_space<vmem>>, vector<1x256xf32>
    %118 = vector.broadcast %117 : vector<1x256xf32> to vector<2x256xf32>
    %119 = arith.addf %116, %118 : vector<2x256xf32>
    %c0_92 = arith.constant 0 : index
    %c0_93 = arith.constant 0 : index
    %120 = vector.load %arg15[%c0_92, %c0_93] : memref<2x256xf32, #tpu.memory_space<vmem>>, vector<2x256xf32>
    tpu.vector_store %arg15[%c0_92, %c0_93], %119 {strides = array<i32>} : memref<2x256xf32, #tpu.memory_space<vmem>>, vector<2x256xf32>,
    return
  }
}

</mosaic_0001>

<bundles_post_ra>
// kernel: tpu_custom_call.1
= control target key start
LH: loop header
LB: loop body
LE: loop exit
PB: predicated region body
PF: predicated region fallthrough
CT: control target
= control target key end

     0   :  { %21 = vsyncpa [#allocation3], 0  ;;  %s1977_s0 = inlined_call_operand.hbm [shape: f32[2,32], index: 0, kind: input, shape index: {}]   ;;  %s1978_s1 = inlined_call_operand.hbm [shape: f32[4,32,32], index: 1, kind: input, shape index: {}]   ;;  %s1979_s2 = inlined_call_operand.hbm [shape: f32[4,1,32], index: 2, kind: input, shape index: {}]   ;;  %s1980_s3 = inlined_call_operand.hbm [shape: f32[4,32,32], index: 3, kind: input, shape index: {}]   ;;  %s1981_s4 = inlined_call_operand.vmem [shape: f32[4,1,32], index: 4, kind: input, shape index: {}]   ;;  %s1982_s5 = inlined_call_operand.hbm [shape: f32[32,32], index: 5, kind: input, shape index: {}]   ;;  %s1983_s6 = inlined_call_operand.hbm [shape: f32[32,32], index: 6, kind: input, shape index: {}]   ;;  %s1984_s7 = inlined_call_operand.vmem [shape: f32[1,32], index: 7, kind: input, shape index: {}]   ;;  %s1985_s8 = inlined_call_operand.hbm [shape: f32[32,32], index: 8, kind: input, shape index: {}]   ;;  %s1986_s9 = inlined_call_operand.vmem [shape: f32[1,32], index: 9, kind: input, shape index: {}]   ;;  %s1987_s10 = inlined_call_operand.hbm [shape: f32[32,32], index: 10, kind: input, shape index: {}]   ;;  %s1988_s11 = inlined_call_operand.vmem [shape: f32[1,32], index: 11, kind: input, shape index: {}]   ;;  %s1989_s12 = inlined_call_operand.hbm [shape: f32[32,256], index: 12, kind: input, shape index: {}]   ;;  %s1990_s13 = inlined_call_operand.vmem [shape: f32[1,256], index: 13, kind: input, shape index: {}]   ;;  %s1991_s14 = inlined_call_operand.hbm [shape: f32[2,32], index: 14, kind: output, shape index: {0}]   ;;  %s1992_s15 = inlined_call_operand.hbm [shape: f32[2,256], index: 15, kind: output, shape index: {1}]  }
   0x1   :  { %22 = vsyncpa [#allocation6], 0 }
   0x2   :  { %23 = vsyncpa [#allocation9], 0 }
   0x3   :  { %24 = vsyncpa [#allocation12], 0 }
   0x4   :  { %25 = vsyncpa [#allocation15], 0 }
   0x5   :  { %26 = vsyncpa [#allocation4], 0 }
   0x6   :  { %27 = vsyncpa [#allocation19], 0  ;;  %s1710_s18 = smov [#allocation5]  }
   0x7   :  { %s43_s19 = sshll.u32 %s1710_s18, 4  ;;  %s44_s19 = int_to_ptr.vmem [resolvable:$true] %s43_s19 }
   0x8   :  { %s1484_s20 = scalar_lea.vmem %s44_s19, 2048  ;;  %p1489_p1 = scmp.lt.s32.totalorder %s44_s19, %s44_s19 }
   0x9   :  { %p1485_p0 = scmp.ne.s32.totalorder %s44_s19, %s1484_s20  ;;  %p1490_p2 = scmp.lt.s32.totalorder %s1484_s20, %s1484_s20 }
   0xb   :  { %p1491_p3 = por %p1490_p2, %p1489_p1 }
   0xd   :  { %p1492_p4 = pnand %p1491_p3, %p1485_p0 }
   0xf   :  { %1495 = shalt.err (!%p1492_p4)
}
  0x10   :  { %s1711_s21 = smov 128   ;;  %s1712_s22 = smov 8  }
  0x11   :  { %49 = dma.hbm_to_vmem [thread:$0]  %s1978_s1, 2048, %s44_s19, [#allocation6], %s1711_s21, %s1711_s21, %s1712_s22  }
  0x12   :  { %s1713_s25 = smov [#allocation8]   ;;  %s1714_s27 = smov [#allocation11]  }
  0x13   :  { %s67_s26 = sshll.u32 %s1713_s25, 4  ;;  %s93_s28 = sshll.u32 %s1714_s27, 4  ;;  %s68_s26 = int_to_ptr.vmem [resolvable:$true] %s67_s26  ;;  %s94_s28 = int_to_ptr.vmem [resolvable:$true] %s93_s28 }
  0x14   :  { %s1504_s29 = scalar_lea.vmem %s68_s26, 2048  ;;  %p1509_p6 = scmp.lt.s32.totalorder %s68_s26, %s68_s26 }
  0x15   :  { %p1505_p5 = scmp.ne.s32.totalorder %s68_s26, %s1504_s29  ;;  %p1510_p7 = scmp.lt.s32.totalorder %s1504_s29, %s1504_s29 }
  0x17   :  { %p1511_p8 = por %p1510_p7, %p1509_p6 }
  0x19   :  { %p1512_p9 = pnand %p1511_p8, %p1505_p5 }
  0x1b   :  { %1515 = shalt.err (!%p1512_p9)
}
  0x1c   :  { %73 = dma.hbm_to_vmem [thread:$0]  %s1980_s3, 2048, %s68_s26, [#allocation9], %s1711_s21, %s1711_s21, %s1712_s22  }
  0x1d   :  { %s1524_s1 = scalar_lea.vmem %s94_s28, 512  ;;  %p1529_p11 = scmp.lt.s32.totalorder %s94_s28, %s94_s28 }
  0x1e   :  { %p1525_p10 = scmp.ne.s32.totalorder %s94_s28, %s1524_s1  ;;  %p1530_p12 = scmp.lt.s32.totalorder %s1524_s1, %s1524_s1 }
  0x20   :  { %p1531_p13 = por %p1530_p12, %p1529_p11 }
  0x22   :  { %p1532_p0 = pnand %p1531_p13, %p1525_p10 }
  0x24   :  { %1535 = shalt.err (!%p1532_p0)
}
  0x25   :  { %99 = dma.hbm_to_vmem [thread:$0]  %s1983_s6, 512, %s94_s28, [#allocation12], %s1711_s21, %s1711_s21, %s1712_s22  }
  0x26   :  { %s1715_s19 = smov [#allocation14]   ;;  %s1716_s23 = smov [#allocation2]  }
  0x27   :  { %s121_s20 = sshll.u32 %s1715_s19, 4  ;;  %s34_s3 = sshll.u32 %s1716_s23, 4  ;;  %s122_s20 = int_to_ptr.vmem [resolvable:$true] %s121_s20  ;;  %s35_s3 = int_to_ptr.vmem [resolvable:$true] %s34_s3 }
  0x28   :  { %s1544_s24 = scalar_lea.vmem %s122_s20, 512  ;;  %p1549_p2 = scmp.lt.s32.totalorder %s122_s20, %s122_s20 }
  0x29   :  { %p1545_p1 = scmp.ne.s32.totalorder %s122_s20, %s1544_s24  ;;  %p1550_p3 = scmp.lt.s32.totalorder %s1544_s24, %s1544_s24 }
  0x2b   :  { %p1551_p4 = por %p1550_p3, %p1549_p2 }
  0x2d   :  { %p1552_p5 = pnand %p1551_p4, %p1545_p1 }
  0x2f   :  { %1555 = shalt.err (!%p1552_p5)
}
  0x30   :  { %127 = dma.hbm_to_vmem [thread:$0]  %s1987_s10, 512, %s122_s20, [#allocation15], %s1711_s21, %s1711_s21, %s1712_s22  }
  0x31   :  { %s1564_s6 = scalar_lea.vmem %s35_s3, 32  ;;  %p1569_p7 = scmp.lt.s32.totalorder %s35_s3, %s35_s3 }
  0x32   :  { %p1565_p6 = scmp.ne.s32.totalorder %s35_s3, %s1564_s6  ;;  %p1570_p8 = scmp.lt.s32.totalorder %s1564_s6, %s1564_s6 }
  0x34   :  { %p1571_p9 = por %p1570_p8, %p1569_p7 }
  0x36   :  { %p1572_p10 = pnand %p1571_p9, %p1565_p6 }
  0x38   :  { %1575 = shalt.err (!%p1572_p10)
}
  0x39   :  { %37 = dma.hbm_to_vmem [thread:$0]  %s1977_s0, 32, %s35_s3, [#allocation3]  }
  0x3a   :  { %s1717_s29 = smov [#allocation7]  }
  0x3b   :  { %s55_s30 = sshll.u32 %s1717_s29, 4  ;;  %s56_s30 = int_to_ptr.vmem [resolvable:$true] %s55_s30 }
  0x3c   :  { %s1584_s16 = scalar_lea.vmem %s56_s30, 64  ;;  %p1589_p12 = scmp.lt.s32.totalorder %s56_s30, %s56_s30 }
  0x3d   :  { %p1585_p11 = scmp.ne.s32.totalorder %s56_s30, %s1584_s16  ;;  %p1590_p13 = scmp.lt.s32.totalorder %s1584_s16, %s1584_s16 }
  0x3f   :  { %p1591_p0 = por %p1590_p13, %p1589_p12 }
  0x41   :  { %p1592_p1 = pnand %p1591_p0, %p1585_p11 }
  0x43   :  { %1595 = shalt.err (!%p1592_p1)
}
  0x44   :  { %s1718_s10 = smov 16   ;;  %s1719_s1 = smov 1  }
  0x45   :  { %61 = dma.hbm_to_vmem [thread:$0]  %s1979_s2, 64, %s56_s30, [#allocation6], %s1718_s10, %s1718_s10, %s1719_s1  }
  0x46   :  { %s1720_s19 = smov [#allocation10]   ;;  %s1721_s20 = smov [#allocation13]  }
  0x47   :  { %s81_s0 = sshll.u32 %s1720_s19, 4  ;;  %s107_s23 = sshll.u32 %s1721_s20, 4  ;;  %s82_s0 = int_to_ptr.vmem [resolvable:$true] %s81_s0  ;;  %s108_s23 = int_to_ptr.vmem [resolvable:$true] %s107_s23 }
  0x48   :  { %s1604_s3 = scalar_lea.vmem %s82_s0, 512  ;;  %p1609_p3 = scmp.lt.s32.totalorder %s82_s0, %s82_s0 }
  0x49   :  { %p1605_p2 = scmp.ne.s32.totalorder %s82_s0, %s1604_s3  ;;  %p1610_p4 = scmp.lt.s32.totalorder %s1604_s3, %s1604_s3 }
  0x4b   :  { %p1611_p5 = por %p1610_p4, %p1609_p3 }
  0x4d   :  { %p1612_p6 = pnand %p1611_p5, %p1605_p2 }
  0x4f   :  { %1615 = shalt.err (!%p1612_p6)
}
  0x50   :  { %87 = dma.hbm_to_vmem [thread:$0]  %s1982_s5, 512, %s82_s0, [#allocation9], %s1711_s21, %s1711_s21, %s1712_s22  }
  0x51   :  { %s1624_s2 = scalar_lea.vmem %s108_s23, 512  ;;  %p1629_p8 = scmp.lt.s32.totalorder %s108_s23, %s108_s23 }
  0x52   :  { %p1625_p7 = scmp.ne.s32.totalorder %s108_s23, %s1624_s2  ;;  %p1630_p9 = scmp.lt.s32.totalorder %s1624_s2, %s1624_s2 }
  0x54   :  { %p1631_p10 = por %p1630_p9, %p1629_p8 }
  0x56   :  { %p1632_p11 = pnand %p1631_p10, %p1625_p7 }
  0x58   :  { %1635 = shalt.err (!%p1632_p11)
}
  0x59   :  { %113 = dma.hbm_to_vmem [thread:$0]  %s1985_s8, 512, %s108_s23, [#allocation12], %s1711_s21, %s1711_s21, %s1712_s22  }
  0x5a   :  { %s1722_s27 = smov [#allocation16]  }
  0x5b   :  { %s135_s28 = sshll.u32 %s1722_s27, 4  ;;  %s136_s28 = int_to_ptr.vmem [resolvable:$true] %s135_s28 }
  0x5c   :  { %s1644_s29 = scalar_lea.vmem %s136_s28, 1024  ;;  %p1649_p13 = scmp.lt.s32.totalorder %s136_s28, %s136_s28 }
  0x5d   :  { %p1645_p12 = scmp.ne.s32.totalorder %s136_s28, %s1644_s29  ;;  %p1650_p0 = scmp.lt.s32.totalorder %s1644_s29, %s1644_s29 }
  0x5f   :  { %p1651_p1 = por %p1650_p0, %p1649_p13 }
  0x61   :  { %p1652_p2 = pnand %p1651_p1, %p1645_p12 }
  0x63   :  { %1655 = shalt.err (!%p1652_p2)
}
  0x64   :  { %s1723_s5 = smov 256  }
  0x65   :  { %141 = dma.hbm_to_vmem [thread:$0]  %s1989_s12, 1024, %s136_s28, [#allocation15], %s1723_s5, %s1723_s5, %s1718_s10  }
  0x66   :  { %1696 = dma.done.wait [#allocation3], 32  }
  0x67   :  { %1697 = vsyncadd [#allocation3], 4294967264 }
  0x68   :  { %1698 = dma.done.wait [#allocation6], 2112  }
  0x69   :  { %1699 = vsyncadd [#allocation6], 4294965184 }
  0x6a   :  { %1700 = dma.done.wait [#allocation9], 2560  }
  0x6b   :  { %1701 = vsyncadd [#allocation9], 4294964736 }
  0x6c   :  { %1702 = dma.done.wait [#allocation12], 1024  }
  0x6d   :  { %1703 = vsyncadd [#allocation12], 4294966272 }
  0x6e   :  { %1704 = dma.done.wait [#allocation15], 1536  }
  0x6f   :  { %1705 = vsyncadd [#allocation15], 4294965760  ;;  %v1724_v0 = vmov 0.0   ;;  %vm1725_vm0 = vmmov 0   ;;  %v175_v1 = vld [vmem:[#allocation5 + $0x18] sm:$0xff]  ;;  %v174_v2 = vld [vmem:[#allocation5 + $0x10] sm:$0xff] }
  0x70   :  { %1337 = vmatprep.subr.mxu0 %v1724_v0  ;;  %1345 = vmatprep.mubr.msk.f32.mxu0 %vm1725_vm0, %v1724_v0  ;;  %v264_v3 = vld [vmem:[#allocation5 + $0x38] sm:$0xff]  ;;  %v173_v4 = vld [vmem:[#allocation5 + $0x8] sm:$0xff]  ;;  %v172_v5 = vld [vmem:[#allocation5] sm:$0xff]  ;;  %vm183_vm1 = vcmask 261120   ;;  %vm525_vm7 = vcmask 254976   ;;  %s1726_s23 = smov [#allocation17]  }
  0x71   :  { %1348 = vmatprep.subr.mxu1 %v1724_v0  ;;  %1356 = vmatprep.mubr.msk.f32.mxu1 %vm1725_vm0, %v1724_v0  ;;  %v1865_v6 = vld [vmem:[#allocation2] sm:$0x3]  ;;  %v263_v7 = vld [vmem:[#allocation5 + $0x30] sm:$0xff]  ;;  %v262_v8 = vld [vmem:[#allocation5 + $0x28] sm:$0xff]  ;;  %s1232_s3 = sshll.u32 %s1726_s23, 4  ;;  %s1233_s3 = int_to_ptr.vmem [resolvable:$true] %s1232_s3 }
  0x72   :  { %1338 = vmatpush3.msra.mxu0 %v175_v1  ;;  %1349 = vmatpush3.msra.mxu1 %v264_v3  ;;  %v261_v9 = vld [vmem:[#allocation5 + $0x20] sm:$0xff]  ;;  %v353_v10 = vld [vmem:[#allocation5 + $0x58] sm:$0xff]  ;;  %v352_v17 = vld [vmem:[#allocation5 + $0x50] sm:$0xff]  ;;  %s1656_s24 = scalar_lea.vmem %s1233_s3, 32  ;;  %p1661_p4 = scmp.lt.s32.totalorder %s1233_s3, %s1233_s3 }
  0x73   :  { %1339 = vmatprep.subr.mxu0 %v1724_v0  ;;  %1350 = vmatprep.subr.mxu1 %v1724_v0  ;;  %v1259_v11 = vld [vmem:[#allocation7] ss:$0 sm:$0xff]  ;;  %v351_v18 = vld [vmem:[#allocation5 + $0x48] sm:$0xff]  ;;  %v442_v20 = vld [vmem:[#allocation5 + $0x78] sm:$0xff]  ;;  %p1657_p3 = scmp.ne.s32.totalorder %s1233_s3, %s1656_s24  ;;  %p1662_p5 = scmp.lt.s32.totalorder %s1656_s24, %s1656_s24 }
  0x74   :  { %1340 = vmatpush3.msra.mxu0 %v174_v2  ;;  %1351 = vmatpush3.msra.mxu1 %v263_v7  ;;  %v350_v19 = vld [vmem:[#allocation5 + $0x40] sm:$0xff]  ;;  %v527_v27 = vld [vmem:[%s1981_s4] sm:$0x1]  ;;  %v534_v29 = vld [vmem:[#allocation8 + $0x30] sm:$0xff] }
  0x75   :  { %1341 = vmatprep.subr.mxu0 %v1724_v0  ;;  %1352 = vmatprep.subr.mxu1 %v1724_v0  ;;  %v1261_v21 = vld [vmem:[#allocation7 + $0x1] ss:$0 sm:$0xff]  ;;  %v529_v30 = vmul.f32 0.2, %v527_v27  ;;  %v533_v31 = vld [vmem:[#allocation8 + $0x28] sm:$0xff]  ;;  %vm528_vm4 = vcmp.ge.f32.partialorder %v527_v27, 0.0  ;;  %p1663_p6 = por %p1662_p5, %p1661_p4 }
  0x76   :  { %1342 = vmatpush3.msra.mxu0 %v173_v4  ;;  %1353 = vmatpush3.msra.mxu1 %v262_v8  ;;  %v535_v26 = vld [vmem:[#allocation8 + $0x38] sm:$0xff]  ;;  %v532_v32 = vld [vmem:[#allocation8 + $0x20] sm:$0xff]  ;;  %v441_v34 = vld [vmem:[#allocation5 + $0x70] sm:$0xff] }
  0x77   :  { %1343 = vmatprep.subr.mxu0 %v1724_v0  ;;  %1354 = vmatprep.subr.mxu1 %v1724_v0  ;;  %v530_v33 = vsel %vm528_vm4, %v527_v27, %v529_v30  ;;  %v440_v35 = vld [vmem:[#allocation5 + $0x68] sm:$0xff]  ;;  %v439_v36 = vld [vmem:[#allocation5 + $0x60] sm:$0xff]  ;;  %v1267_v44 = vld [vmem:[%s1981_s4 + $0x1] sm:$0x1]  ;;  %p1664_p7 = pnand %p1663_p6, %p1657_p3 }
  0x78   :  { %1344 = vmatpush3.msra.mxu0 %v172_v5  ;;  %1355 = vmatpush3.msra.mxu1 %v261_v9  ;;  %v1263_v37 = vld [vmem:[#allocation7 + $0x2] ss:$0 sm:$0xff]  ;;  %v617_v45 = vld [vmem:[#allocation8 + $0x50] sm:$0xff]  ;;  %v616_v47 = vld [vmem:[#allocation8 + $0x48] sm:$0xff] }
  0x79   :  { %1346 = vmatmul.mubr.msk.f32.vlgmr.msra.gmra.mxu0 %vm183_vm1, %v1865_v6  ;;  %1359 = vmatprep.subr.mxu0 %v1724_v0  ;;  %v618_v42 = vld [vmem:[#allocation8 + $0x58] sm:$0xff]  ;;  %v615_v50 = vld [vmem:[#allocation8 + $0x40] sm:$0xff]  ;;  %v700_v54 = vld [vmem:[#allocation8 + $0x70] sm:$0xff] }
  0x7a   :  { %1367 = vmatprep.mubr.msk.f32.mxu0 %vm1725_vm0, %v1724_v0  ;;  %1370 = vmatprep.subr.mxu1 %v1724_v0  ;;  %v701_v53 = vld [vmem:[#allocation8 + $0x78] sm:$0xff]  ;;  %v699_v55 = vld [vmem:[#allocation8 + $0x68] sm:$0xff]  ;;  %v698_v56 = vld [vmem:[#allocation8 + $0x60] sm:$0xff] }
  0x7b   :  { %1360 = vmatpush3.msra.mxu0 %v353_v10  ;;  %v784_v57 = vld [vmem:[#allocation11 + $0x18] sm:$0xff]  ;;  %v783_v58 = vld [vmem:[#allocation11 + $0x10] sm:$0xff]  ;;  %v777_v10 = vld [vmem:[#allocation10] sm:$0xff] }
  0x7c   :  { %1361 = vmatprep.subr.mxu0 %v1724_v0  ;;  %v1265_v59 = vld [vmem:[#allocation7 + $0x3] ss:$0 sm:$0xff]  ;;  %v1269_v1 = vld [vmem:[%s1981_s4 + $0x2] sm:$0x1]  ;;  %v779_v9 = vld [vmem:[#allocation10 + $0x10] sm:$0xff] }
  0x7d   :  { %1362 = vmatpush3.msra.mxu0 %v352_v17  ;;  %v780_v7 = vld [vmem:[#allocation10 + $0x18] sm:$0xff] }
  0x7e   :  { %1363 = vmatprep.subr.mxu0 %v1724_v0 }
  0x7f   :  { %1364 = vmatpush3.msra.mxu0 %v351_v18 }
  0x80   :  { %1365 = vmatprep.subr.mxu0 %v1724_v0 }
  0x81   :  { %1366 = vmatpush3.msra.mxu0 %v350_v19  ;;  %v949_v19 = vld [vmem:[#allocation13 + $0x18] sm:$0xff] }
  0x82   :  { %1381 = vmatprep.subr.mxu0 %v1724_v0 }
 0x139   :  { %v253_v12 = vpop.f32.mrf.mxu0 }
 0x13a   :  { %v254_v13 = vadd.f32 %v1259_v11, %v253_v12  ;;  %v782_v11 = vld [vmem:[#allocation11 + $0x8] sm:$0xff]  ;;  %v781_v12 = vld [vmem:[#allocation11] sm:$0xff] }
 0x13b   :  { %v1347_v14 = vpop.f32.mrf.mxu0 }
 0x13c   :  { %vm257_vm2 = vcmp.ge.f32.partialorder %v254_v13, 0.0  ;;  %v258_v15 = vmul.f32 0.2, %v254_v13 }
 0x13e   :  { %v259_v16 = vsel %vm257_vm2, %v254_v13, %v258_v15  ;;  %v1271_v13 = vld [vmem:[%s1981_s4 + $0x3] sm:$0x1] }
 0x13f   :  { %1357 = vmatmul.mubr.msk.f32.vlgmr.msra.gmra.mxu1 %vm183_vm1, %v259_v16 }
 0x140   :  { %1378 = vmatprep.mubr.msk.f32.mxu1 %vm1725_vm0, %v1724_v0  ;;  %1371 = vmatpush3.msra.mxu1 %v442_v20  ;;  %v948_v20 = vld [vmem:[#allocation13 + $0x10] sm:$0xff] }
 0x141   :  { %1372 = vmatprep.subr.mxu1 %v1724_v0 }
 0x142   :  { %1373 = vmatpush3.msra.mxu1 %v441_v34 }
 0x143   :  { %1374 = vmatprep.subr.mxu1 %v1724_v0 }
 0x144   :  { %1375 = vmatpush3.msra.mxu1 %v440_v35  ;;  %v1035_v35 = vld [vmem:[#allocation14 + $0x10] sm:$0xff] }
 0x145   :  { %1376 = vmatprep.subr.mxu1 %v1724_v0 }
 0x146   :  { %1377 = vmatpush3.msra.mxu1 %v439_v36  ;;  %v1034_v36 = vld [vmem:[#allocation14 + $0x8] sm:$0xff] }
 0x147   :  { %1392 = vmatprep.subr.mxu1 %v1724_v0 }
 0x1ff   :  { %v342_v22 = vpop.f32.mrf.mxu1 }
 0x200   :  { %v343_v23 = vadd.f32 %v1261_v21, %v342_v22  ;;  %v947_v21 = vld [vmem:[#allocation13 + $0x8] sm:$0xff]  ;;  %v946_v22 = vld [vmem:[#allocation13] sm:$0xff] }
 0x201   :  { %v1358_v24 = vpop.f32.mrf.mxu1 }
 0x202   :  { %vm346_vm3 = vcmp.ge.f32.partialorder %v343_v23, 0.0  ;;  %v347_v25 = vmul.f32 0.2, %v343_v23  ;;  %v858_v24 = vlaneseq }
 0x204   :  { %v348_v28 = vsel %vm346_vm3, %v343_v23, %v347_v25  ;;  %v1036_v23 = vld [vmem:[#allocation14 + $0x18] sm:$0xff]  ;;  %v1945_v25 = vshrl.u32 %v858_v24, 7 }
 0x205   :  { %1368 = vmatmul.mubr.msk.f32.vlgmr.msra.gmra.mxu0 %vm183_vm1, %v348_v28 }
 0x206   :  { %1382 = vmatpush3.msra.mxu0 %v535_v26  ;;  %1389 = vmatprep.mubr.msk.f32.mxu0 %vm1725_vm0, %v1724_v0  ;;  %v860_v26 = vsub.s32 0, %v1945_v25 }
 0x207   :  { %1383 = vmatprep.subr.mxu0 %v1724_v0 }
 0x208   :  { %1384 = vmatpush3.msra.mxu0 %v534_v29  ;;  %v1275_v29 = vld [vmem:[%s1984_s7] ss:$0 sm:$0xff] }
 0x209   :  { %1385 = vmatprep.subr.mxu0 %v1724_v0 }
 0x20a   :  { %1386 = vmatpush3.msra.mxu0 %v533_v31 }
 0x20b   :  { %1387 = vmatprep.subr.mxu0 %v1724_v0 }
 0x20c   :  { %1388 = vmatpush3.msra.mxu0 %v532_v32 }
 0x20d   :  { %1390 = vmatmul.mubr.msk.f32.vlgmr.msra.gmra.mxu0 %vm183_vm1, %v530_v33  ;;  %1403 = vmatprep.subr.mxu0 %v1724_v0 }
 0x20e   :  { %1411 = vmatprep.mubr.msk.f32.mxu0 %vm1725_vm0, %v1724_v0  ;;  %1404 = vmatpush3.msra.mxu0 %v701_v53 }
 0x20f   :  { %1405 = vmatprep.subr.mxu0 %v1724_v0 }
 0x210   :  { %1406 = vmatpush3.msra.mxu0 %v700_v54 }
 0x211   :  { %1407 = vmatprep.subr.mxu0 %v1724_v0 }
 0x212   :  { %1408 = vmatpush3.msra.mxu0 %v699_v55 }
 0x213   :  { %1409 = vmatprep.subr.mxu0 %v1724_v0 }
 0x214   :  { %1410 = vmatpush3.msra.mxu0 %v698_v56 }
 0x215   :  { %1425 = vmatprep.subr.mxu0 %v1724_v0 }
 0x2c5   :  { %v431_v38 = vpop.f32.mrf.mxu0 }
 0x2c6   :  { %v432_v39 = vadd.f32 %v1263_v37, %v431_v38  ;;  %v1033_v37 = vld [vmem:[#allocation14] sm:$0xff]  ;;  %v1127_v38 = vld [vmem:[#allocation16 + $0x38] sm:$0xff] }
 0x2c7   :  { %v1369_v40 = vpop.f32.mrf.mxu0 }
 0x2c8   :  { %vm435_vm5 = vcmp.ge.f32.partialorder %v432_v39, 0.0  ;;  %v436_v41 = vmul.f32 0.2, %v432_v39  ;;  %v1276_v40 = vld [vmem:[%s1986_s9] ss:$0 sm:$0xff] }
 0x2ca   :  { %v437_v43 = vsel %vm435_vm5, %v432_v39, %v436_v41  ;;  %v1126_v39 = vld [vmem:[#allocation16 + $0x30] sm:$0xff] }
 0x2cb   :  { %1379 = vmatmul.mubr.msk.f32.vlgmr.msra.gmra.mxu1 %vm183_vm1, %v437_v43 }
 0x2cc   :  { %1393 = vmatpush3.msra.mxu1 %v618_v42  ;;  %1400 = vmatprep.mubr.msk.f32.mxu1 %vm1725_vm0, %v1724_v0 }
 0x2cd   :  { %v607_v46 = vpop.f32.mrf.mxu0  ;;  %1394 = vmatprep.subr.mxu1 %v1724_v0 }
 0x2ce   :  { %v608_v48 = vadd.f32 %v1267_v44, %v607_v46  ;;  %1395 = vmatpush3.msra.mxu1 %v617_v45  ;;  %v1125_v46 = vld [vmem:[#allocation16 + $0x28] sm:$0xff] }
 0x2cf   :  { %v1391_v49 = vpop.f32.mrf.mxu0  ;;  %1396 = vmatprep.subr.mxu1 %v1724_v0 }
 0x2d0   :  { %vm611_vm6 = vcmp.ge.f32.partialorder %v608_v48, 0.0  ;;  %v612_v51 = vmul.f32 0.2, %v608_v48  ;;  %1397 = vmatpush3.msra.mxu1 %v616_v47  ;;  %v1123_v47 = vld [vmem:[#allocation16 + $0x18] sm:$0xff]  ;;  %v1121_v49 = vld [vmem:[#allocation16 + $0x8] sm:$0xff] }
 0x2d1   :  { %1398 = vmatprep.subr.mxu1 %v1724_v0 }
 0x2d2   :  { %v613_v52 = vsel %vm611_vm6, %v608_v48, %v612_v51  ;;  %1399 = vmatpush3.msra.mxu1 %v615_v50  ;;  %v1122_v48 = vld [vmem:[#allocation16 + $0x10] sm:$0xff]  ;;  %v1120_v50 = vld [vmem:[#allocation16] sm:$0xff]  ;;  %v1278_v51 = vld [vmem:[%s1988_s11] ss:$0 sm:$0xff] }
 0x2d3   :  { %1401 = vmatmul.mubr.msk.f32.vlgmr.msra.gmra.mxu1 %vm183_vm1, %v613_v52  ;;  %1414 = vmatprep.subr.mxu1 %v1724_v0 }
 0x2d4   :  { %1422 = vmatprep.mubr.msk.f32.mxu1 %vm1725_vm0, %v1724_v0  ;;  %1415 = vmatpush3.msra.mxu1 %v784_v57 }
 0x2d5   :  { %1416 = vmatprep.subr.mxu1 %v1724_v0 }
 0x2d6   :  { %1417 = vmatpush3.msra.mxu1 %v783_v58 }
 0x2d7   :  { %1418 = vmatprep.subr.mxu1 %v1724_v0 }
 0x2d8   :  { %1419 = vmatpush3.msra.mxu1 %v782_v11 }
 0x2d9   :  { %1420 = vmatprep.subr.mxu1 %v1724_v0 }
 0x2da   :  { %1421 = vmatpush3.msra.mxu1 %v781_v12 }
 0x2db   :  { %1436 = vmatprep.subr.mxu1 %v1724_v0 }
 0x38b   :  { %v520_v60 = vpop.f32.mrf.mxu1 }
 0x38c   :  { %v521_v61 = vadd.f32 %v1265_v59, %v520_v60 }
 0x38d   :  { %v1380_v62 = vpop.f32.mrf.mxu1 }
 0x38e   :  { %v524_v63 = vadd.f32 %v521_v61, %v1865_v6  ;;  %v778_v6 = vld [vmem:[#allocation10 + $0x8] sm:$0xff] }
 0x390   :  { %526 = vst.msk [vmem:[#allocation17] sm:$0x3] %vm525_vm7, %v524_v63 }
 0x393   :  { %v690_v2 = vpop.f32.mrf.mxu1 }
 0x394   :  { %v691_v3 = vadd.f32 %v1269_v1, %v690_v2 }
 0x395   :  { %v1402_v4 = vpop.f32.mrf.mxu1 }
 0x396   :  { %vm694_vm8 = vcmp.ge.f32.partialorder %v691_v3, 0.0  ;;  %v695_v5 = vmul.f32 0.2, %v691_v3 }
 0x398   :  { %v696_v8 = vsel %vm694_vm8, %v691_v3, %v695_v5 }
 0x399   :  { %1412 = vmatmul.mubr.msk.f32.vlgmr.msra.gmra.mxu0 %vm183_vm1, %v696_v8 }
 0x39a   :  { %1426 = vmatpush3.msra.mxu0 %v780_v7  ;;  %1433 = vmatprep.mubr.msk.f32.mxu0 %vm1725_vm0, %v1724_v0 }
 0x39b   :  { %1427 = vmatprep.subr.mxu0 %v1724_v0 }
 0x39c   :  { %1428 = vmatpush3.msra.mxu0 %v779_v9 }
 0x39d   :  { %1429 = vmatprep.subr.mxu0 %v1724_v0 }
 0x39e   :  { %1430 = vmatpush3.msra.mxu0 %v778_v6 }
 0x39f   :  { %1431 = vmatprep.subr.mxu0 %v1724_v0 }
 0x3a0   :  { %1432 = vmatpush3.msra.mxu0 %v777_v10 }
 0x3a1   :  { %1434 = vmatmul.mubr.msk.f32.vlgmr.msra.gmra.mxu0 %vm183_vm1, %v524_v63  ;;  %1447 = vmatprep.subr.mxu0 %v1724_v0 }
 0x3a2   :  { %1455 = vmatprep.mubr.msk.f32.mxu0 %vm1725_vm0, %v1724_v0  ;;  %1448 = vmatpush3.msra.mxu0 %v1036_v23 }
 0x3a3   :  { %1449 = vmatprep.subr.mxu0 %v1724_v0 }
 0x3a4   :  { %1450 = vmatpush3.msra.mxu0 %v1035_v35 }
 0x3a5   :  { %1451 = vmatprep.subr.mxu0 %v1724_v0 }
 0x3a6   :  { %1452 = vmatpush3.msra.mxu0 %v1034_v36 }
 0x3a7   :  { %1453 = vmatprep.subr.mxu0 %v1724_v0 }
 0x3a8   :  { %1454 = vmatpush3.msra.mxu0 %v1033_v37 }
 0x459   :  { %v773_v14 = vpop.f32.mrf.mxu0 }
 0x45a   :  { %v774_v15 = vadd.f32 %v1271_v13, %v773_v14 }
 0x45b   :  { %v1413_v16 = vpop.f32.mrf.mxu0 }
 0x45c   :  { %1423 = vmatmul.mubr.msk.f32.vlgmr.msra.gmra.mxu1 %vm183_vm1, %v774_v15 }
 0x45d   :  { %1444 = vmatprep.mubr.msk.f32.mxu1 %vm1725_vm0, %v1724_v0  ;;  %1437 = vmatpush3.msra.mxu1 %v949_v19 }
 0x45e   :  { %1438 = vmatprep.subr.mxu1 %v1724_v0 }
 0x45f   :  { %1439 = vmatpush3.msra.mxu1 %v948_v20 }
 0x460   :  { %1440 = vmatprep.subr.mxu1 %v1724_v0 }
 0x461   :  { %v931_v17 = vpop.f32.mrf.mxu0  ;;  %1441 = vmatpush3.msra.mxu1 %v947_v21 }
 0x462   :  { %1442 = vmatprep.subr.mxu1 %v1724_v0 }
 0x463   :  { %v1435_v18 = vpop.f32.mrf.mxu0  ;;  %1443 = vmatpush3.msra.mxu1 %v946_v22 }
 0x464   :  { %1167 = vmatprep.subr.mxu1 %v1127_v38 }
 0x51c   :  { %v854_v27 = vpop.f32.mrf.mxu1 }
 0x51d   :  { %v861_v28 = vrot.slane %v854_v27, %v860_v26 }
 0x51e   :  { %v1424_v30 = vpop.f32.mrf.mxu1 }
 0x51f   :  { %v932_v31 = vadd.f32 %v931_v17, %v861_v28 }
 0x521   :  { %v942_v32 = vadd.f32 %v1275_v29, %v932_v31 }
 0x523   :  { %v944_v33 = vmul.f32 0.2, %v942_v32  ;;  %vm943_vm9 = vcmp.ge.f32.partialorder %v942_v32, 0.0 }
 0x525   :  { %v945_v34 = vsel %vm943_vm9, %v942_v32, %v944_v33 }
 0x526   :  { %1445 = vmatmul.mubr.msk.f32.vlgmr.msra.gmra.mxu1 %vm183_vm1, %v945_v34 }
 0x527   :  { %1207 = vmatprep.mubr.f32.mxu1 %v1724_v0  ;;  %1168 = vmatpush1.msra.mxu1 %v1126_v39  ;;  %v1124_v0 = vld [vmem:[#allocation16 + $0x20] sm:$0xff] }
 0x528   :  { %1169 = vmatprep.subr.mxu1 %v1125_v46 }
 0x529   :  { %1170 = vmatpush1.msra.mxu1 %v1124_v0 }
 0x52a   :  { %1171 = vmatprep.subr.mxu1 %v1123_v47 }
 0x52b   :  { %1172 = vmatpush1.msra.mxu1 %v1122_v48 }
 0x52c   :  { %1173 = vmatprep.subr.mxu1 %v1121_v49 }
 0x52d   :  { %1174 = vmatpush1.msra.mxu1 %v1120_v50 }
 0x5e6   :  { %v1026_v41 = vpop.f32.mrf.mxu1 }
 0x5e7   :  { %v1027_v42 = vadd.f32 %v1276_v40, %v1026_v41 }
 0x5e8   :  { %v1446_v43 = vpop.f32.mrf.mxu1 }
 0x5e9   :  { %vm1030_vm10 = vcmp.ge.f32.partialorder %v1027_v42, 0.0  ;;  %v1031_v44 = vmul.f32 0.2, %v1027_v42 }
 0x5eb   :  { %v1032_v45 = vsel %vm1030_vm10, %v1027_v42, %v1031_v44 }
 0x5ec   :  { %1456 = vmatmul.mubr.msk.f32.vlgmr.msra.gmra.mxu0 %vm183_vm1, %v1032_v45 }
 0x6ac   :  { %v1113_v52 = vpop.f32.mrf.mxu0 }
 0x6ad   :  { %v1114_v53 = vadd.f32 %v1278_v51, %v1113_v52 }
 0x6ae   :  { %v1457_v54 = vpop.f32.mrf.mxu0 }
 0x6af   :  { %vm1117_vm11 = vcmp.ge.f32.partialorder %v1114_v53, 0.0  ;;  %v1118_v55 = vmul.f32 0.2, %v1114_v53 }
 0x6b1   :  { %v1119_v56 = vsel %vm1117_vm11, %v1114_v53, %v1118_v55 }
 0x6b2   :  { %1280 = vmatmul.mubr.msk.f32.vlgmr.msra.gmra.mxu1 %vm183_vm1, %v1119_v56 }
 0x6b3   :  { %1667 = shalt.err (!%p1664_p7)
}
 0x6b4   :  { %1235 = dma.vmem_to_hbm [thread:$0]  %s1233_s3, 32, %s1991_s14, [#allocation4]   ;;  %v1136_v57 = vsub.s32 1, %v1945_v25  ;;  %v1128_v58 = vld [vmem:[%s1990_s13] sm:$0x3] }
 0x6b5   :  { %v1133_v59 = vrot.slane %v1128_v58, %v860_v26  ;;  %s1727_s6 = smov [#allocation18]  }
 0x6b6   :  { %v1137_v60 = vrot.slane %v1128_v58, %v1136_v57  ;;  %s1242_s27 = sshll.u32 %s1727_s6, 4  ;;  %s1243_s27 = int_to_ptr.vmem [resolvable:$true] %s1242_s27 }
 0x6b7   :  { %s1676_s14 = scalar_lea.vmem %s1243_s27, 64  ;;  %p1681_p9 = scmp.lt.s32.totalorder %s1243_s27, %s1243_s27 }
 0x6b8   :  { %p1677_p8 = scmp.ne.s32.totalorder %s1243_s27, %s1676_s14  ;;  %p1682_p10 = scmp.lt.s32.totalorder %s1676_s14, %s1676_s14 }
 0x6ba   :  { %p1683_p11 = por %p1682_p10, %p1681_p9 }
 0x6bc   :  { %p1684_p12 = pnand %p1683_p11, %p1677_p8 }
 0x772   :  { %v1209_v61 = vpop.f32.mrf.mxu1 }
 0x773   :  { %v1210_v63 = vadd.f32 %v1209_v61, %v1133_v59 }
 0x774   :  { %v1211_v62 = vpop.f32.mrf.mxu1 }
 0x775   :  { %v1212_v1 = vadd.f32 %v1211_v62, %v1137_v60 }
 0x777   :  { %v1216_v2 = vcombine.low %v1210_v63, %v1212_v1 }
 0x779   :  { %1281 = vst.sshfl [vmem:[#allocation18] sm:$0x33 pattern:$0x76325410] %v1216_v2 }
 0x77a   :  { %1687 = shalt.err (!%p1684_p12)
}
 0x77b   :  { %1245 = dma.vmem_to_hbm [thread:$0]  %s1243_s27, 64, %s1992_s15, [#allocation19]  }
 0x77c   :  { %1706 = dma.done.wait [#allocation4], 32  }
 0x77d   :  { %1707 = vsyncadd [#allocation4], 4294967264 }
 0x77e   :  { %1708 = dma.done.wait [#allocation19], 64  }
 0x77f   :  { %1709 = vsyncadd [#allocation19], 4294967232 }
 0x780   :  { %1252 = vsyncpa [#allocation3], 1 }
 0x781   :  { %1253 = vsyncpa [#allocation6], 1 }
 0x782   :  { %1254 = vsyncpa [#allocation9], 1 }
 0x783   :  { %1255 = vsyncpa [#allocation12], 1 }
 0x784   :  { %1256 = vsyncpa [#allocation15], 1 }
 0x785   :  { %1257 = vsyncpa [#allocation4], 1 }
 0x786   :  { %1258 = vsyncpa [#allocation19], 1 }

</bundles_post_ra>
